<compile_context>
chip_gen: v5e
topology: v5e:2x2
jax: 0.10.0
libtpu: 0.0.40
codegen_flags: <defaults>
</compile_context>

<pallas_src>
import functools

import jax
import jax.numpy as jnp
from jax.experimental import pallas as pl
from jax.experimental.pallas import tpu as pltpu


def _cnn_encoder_kernel(x_ref, w_ref, b_ref, o_ref, *, seq_len, batch):
    # x_ref : (C_in, N)        lane-dense input slab, N = B*L (batch-major)
    # w_ref : (3, C_out, C_in) bf16 conv taps (BN scale folded); tap t hits p+t-1
    # b_ref : (C_out, 1)       f32 folded BatchNorm shift
    # o_ref : (C_out, B)       pooled output, one store
    x = x_ref[...]                                       # (C_in, N) f32
    n = x.shape[-1]

    # Per-sequence position from a (1, N) iota (broadcast over sublanes).
    # (% is an AND here since L is a power of two; for general L precompute
    #  the two masks in the wrapper instead.)
    lpos = jax.lax.broadcasted_iota(jnp.int32, (1, n), 1) % seq_len

    # Halo via XLU lane rotation; boundary masks are the zero padding and also
    # zero the wrap-around.  Positive rotation amounts only.
    x_m1 = jnp.where(lpos == 0, 0.0, pltpu.roll(x, 1, axis=1))            # p-1
    x_p1 = jnp.where(lpos == seq_len - 1, 0.0,
                     pltpu.roll(x, n - 1, axis=1))                        # p+1

    # Conv + folded BN scale as three accumulating MXU dots (bf16 operands,
    # f32 accumulation).  No (3*C_in+1, N) im2col RHS is materialised.
    bf16 = jnp.bfloat16
    y = jnp.dot(w_ref[0], x_m1.astype(bf16), preferred_element_type=jnp.float32)
    y += jnp.dot(w_ref[1], x.astype(bf16), preferred_element_type=jnp.float32)
    y += jnp.dot(w_ref[2], x_p1.astype(bf16), preferred_element_type=jnp.float32)
    y = jnp.maximum(y + b_ref[...], 0.0)                 # BN shift (f32) + ReLU

    # AdaptiveMaxPool2d(1): segmented max over each length-L window via a
    # log2(L) roll+max tree.  Invariant: m[:, j] = max(y[:, j : j+win]) for the
    # lanes we read; after the tree lane b*L holds the max of sequence b.
    m = y
    win = 1
    while win < seq_len:
        s = min(win, seq_len - win)
        m = jnp.maximum(m, pltpu.roll(m, n - s, axis=1))  # "look ahead" by s
        win += s
    pooled = jnp.concatenate(
        [m[:, b * seq_len:b * seq_len + 1] for b in range(batch)], axis=1)
    o_ref[...] = pooled.astype(o_ref.dtype)               # (C_out, B)


def cnn_encoder_forward(x, w4, gamma, beta, run_mean, run_var, eps=1e-5):
    """x: (B, C_in, L) f32; w4: (C_out, C_in, 3, 3) Conv2d weight (no bias)."""
    B, C_in, L = x.shape
    C_out = w4.shape[0]

    # Eval-mode BatchNorm fold:  y = scale * conv(x) + shift.
    scale = gamma / jnp.sqrt(run_var + eps)                     # (C_out,)
    shift = beta - run_mean * scale                             # (C_out,)

    # H == 1 with padding=1 => only the middle 3x3 row ever sees data.
    # w_taps[t] multiplies the input at position p + (t - 1).
    w_taps = jnp.transpose(w4[:, :, 1, :], (2, 0, 1))           # (3, C_out, C_in)
    w_taps = (w_taps * scale[None, :, None]).astype(jnp.bfloat16)
    shift_col = shift[:, None].astype(jnp.float32)              # (C_out, 1)

    # Layout plumbing only: lane-dense (C_in, B*L) slab so the whole batch
    # rides the matmul N axis.  TODO(synk): at scale have the producer emit
    # this layout (or grid over B on the native (B, C_in, L)) to avoid this
    # extra HBM pass before the kernel.
    x2 = jnp.transpose(x, (1, 0, 2)).reshape(C_in, B * L)

    kernel = functools.partial(_cnn_encoder_kernel, seq_len=L, batch=B)
    out_cb = pl.pallas_call(
        kernel,
        out_shape=jax.ShapeDtypeStruct((C_out, B), x.dtype),
        grid=(1,),   # whole problem in one step; ~KBs of data, 1 vreg of output
        in_specs=[
            pl.BlockSpec((C_in, B * L), lambda i: (0, 0)),
            pl.BlockSpec((3, C_out, C_in), lambda i: (0, 0, 0)),
            pl.BlockSpec((C_out, 1), lambda i: (0, 0)),
        ],
        out_specs=pl.BlockSpec((C_out, B), lambda i: (0, 0)),
        compiler_params=pltpu.CompilerParams(
            dimension_semantics=("arbitrary",)),
    )(x2, w_taps, shift_col)

    # Flatten(start_dim=1)/squeeze of the torch module -> (B, C_out).  At
    # production C_out this transpose moves into the kernel as a lane-dense
    # (B_tile, C_out) store; at (8, 2) both dims are sub-lane-width.
    return out_cb.T


def reference_forward(x, w4, gamma, beta, run_mean, run_var, eps=1e-5):
    """Pure-JAX f32 reference mirroring the PyTorch (eval-mode) forward."""
    xi = x[:, :, None, :]                                # (B, C_in, 1, L) NCHW
    y = jax.lax.conv_general_dilated(
        xi, w4, window_strides=(1, 1), padding=((1, 1), (1, 1)),
        dimension_numbers=("NCHW", "OIHW", "NCHW"))
    inv_std = 1.0 / jnp.sqrt(run_var + eps)
    y = (y - run_mean[None, :, None, None]) * inv_std[None, :, None, None]
    y = y * gamma[None, :, None, None] + beta[None, :, None, None]
    y = jnp.maximum(y, 0.0)
    return jnp.max(y, axis=(2, 3))                       # MaxPool(1) + Flatten


if __name__ == "__main__":
    key = jax.random.PRNGKey(0)
    # B*L = 128 so the fused matmuls use the full lane width.
    B, C_in, C_out, L = 2, 4, 8, 64
    k1, k2, k3, k4, k5, k6 = jax.random.split(key, 6)

    x = jax.random.normal(k1, (B, C_in, L), jnp.float32)
    w4 = jax.random.normal(k2, (C_out, C_in, 3, 3), jnp.float32) * 0.1
    gamma = 1.0 + 0.1 * jax.random.normal(k3, (C_out,), jnp.float32)
    beta = 0.1 * jax.random.normal(k4, (C_out,), jnp.float32)
    run_mean = 0.1 * jax.random.normal(k5, (C_out,), jnp.float32)
    run_var = jax.random.uniform(k6, (C_out,), jnp.float32,
                                 minval=0.5, maxval=1.5)

    out = cnn_encoder_forward(x, w4, gamma, beta, run_mean, run_var)
    out = jax.block_until_ready(out)

    ref = reference_forward(x, w4, gamma, beta, run_mean, run_var)
    assert out.shape == (B, C_out), out.shape
    # bf16 MXU operands (f32 accumulation) -> loosen tolerance vs f32 reference.
    assert jnp.allclose(out, ref, atol=2e-2, rtol=2e-2), (out, ref)

    print("KERNEL_OK")
</pallas_src>

<mosaic_0001>
module attributes {stable_mosaic.version = 11 : i64} {
  func.func @_cnn_encoder_kernel(%arg0: i32, %arg1: memref<4x128xf32, #tpu.memory_space<vmem>>, %arg2: memref<3x8x4xbf16, #tpu.memory_space<vmem>>, %arg3: memref<8x1xf32, #tpu.memory_space<vmem>>, %arg4: memref<8x2xf32, #tpu.memory_space<vmem>>) attributes {dimension_semantics = [#tpu.dimension_semantics<arbitrary>], iteration_bounds = array<i64: 1>, scalar_prefetch = 0 : i64, scratch_operands = 0 : i64, tpu.core_type = #tpu.core_type<tc>, window_params = [{pipeline_mode = #tpu.pipeline_mode<synchronous>, transform_indices = @transform_0, window_bounds = array<i64: 4, 128>}, {pipeline_mode = #tpu.pipeline_mode<synchronous>, transform_indices = @transform_1, window_bounds = array<i64: 3, 8, 4>}, {pipeline_mode = #tpu.pipeline_mode<synchronous>, transform_indices = @transform_2, window_bounds = array<i64: 8, 1>}, {pipeline_mode = #tpu.pipeline_mode<synchronous>, transform_indices = @transform_3, window_bounds = array<i64: 8, 2>}]} {
    %c0 = arith.constant 0 : index
    %c0_0 = arith.constant 0 : index
    %0 = vector.load %arg1[%c0, %c0_0] : memref<4x128xf32, #tpu.memory_space<vmem>>, vector<4x128xf32>
    %1 = tpu.iota {dimensions = array<i32: 1>} : vector<1x128xi32>
    %c64_i32 = arith.constant 64 : i32
    %c0_i32 = arith.constant 0 : i32
    %2 = arith.cmpi eq, %c64_i32, %c0_i32 : i32
    %c1_i32 = arith.constant 1 : i32
    %3 = arith.select %2, %c1_i32, %c64_i32 : i32
    %4 = vector.broadcast %3 : i32 to vector<1x128xi32>
    %5 = arith.remsi %1, %4 : vector<1x128xi32>
    %c0_i32_1 = arith.constant 0 : i32
    %6 = vector.broadcast %c0_i32_1 : i32 to vector<1x128xi32>
    %7 = arith.cmpi ne, %5, %6 : vector<1x128xi32>
    %c0_i32_2 = arith.constant 0 : i32
    %8 = vector.broadcast %c0_i32_2 : i32 to vector<1x128xi32>
    %9 = arith.cmpi slt, %5, %8 : vector<1x128xi32>
    %c0_i32_3 = arith.constant 0 : i32
    %10 = arith.cmpi slt, %3, %c0_i32_3 : i32
    %11 = vector.broadcast %10 : i1 to vector<1x128xi1>
    %12 = vector.broadcast %11 : vector<1x128xi1> to vector<1x128xi1>
    %13 = arith.xori %9, %12 : vector<1x128xi1>
    %14 = arith.andi %13, %7 : vector<1x128xi1>
    %15 = vector.broadcast %3 : i32 to vector<1x128xi32>
    %16 = arith.addi %5, %15 : vector<1x128xi32>
    %17 = arith.select %14, %16, %5 : vector<1x128xi1>, vector<1x128xi32>
    %c0_i32_4 = arith.constant 0 : i32
    %18 = vector.broadcast %c0_i32_4 : i32 to vector<1x128xi32>
    %19 = arith.cmpi eq, %17, %18 : vector<1x128xi32>
    %c1_i32_5 = arith.constant 1 : i32
    %20 = tpu.dynamic_rotate %0 by %c1_i32_5 dim 1 : vector<4x128xf32>, i32 -> vector<4x128xf32>
    %cst = arith.constant 0.000000e+00 : f32
    %21 = vector.shape_cast %19 : vector<1x128xi1> to vector<1x128xi1>
    %22 = vector.broadcast %21 : vector<1x128xi1> to vector<4x128xi1>
    %23 = vector.broadcast %cst : f32 to vector<4x128xf32>
    %24 = arith.select %22, %23, %20 : vector<4x128xi1>, vector<4x128xf32>
    %c63_i32 = arith.constant 63 : i32
    %25 = vector.broadcast %c63_i32 : i32 to vector<1x128xi32>
    %26 = arith.cmpi eq, %17, %25 : vector<1x128xi32>
    %c127_i32 = arith.constant 127 : i32
    %27 = tpu.dynamic_rotate %0 by %c127_i32 dim 1 : vector<4x128xf32>, i32 -> vector<4x128xf32>
    %cst_6 = arith.constant 0.000000e+00 : f32
    %28 = vector.shape_cast %26 : vector<1x128xi1> to vector<1x128xi1>
    %29 = vector.broadcast %28 : vector<1x128xi1> to vector<4x128xi1>
    %30 = vector.broadcast %cst_6 : f32 to vector<4x128xf32>
    %31 = arith.select %29, %30, %27 : vector<4x128xi1>, vector<4x128xf32>
    %c0_7 = arith.constant 0 : index
    %c0_8 = arith.constant 0 : index
    %c0_9 = arith.constant 0 : index
    %32 = vector.load %arg2[%c0_7, %c0_8, %c0_9] : memref<3x8x4xbf16, #tpu.memory_space<vmem>>, vector<1x8x4xbf16>
    %33 = vector.shape_cast %32 : vector<1x8x4xbf16> to vector<8x4xbf16>
    %34 = arith.truncf %24 : vector<4x128xf32> to vector<4x128xbf16>
    %cst_10 = arith.constant dense<0.000000e+00> : vector<8x128xf32>
    %35 = tpu.matmul %33, %34, %cst_10 {dimension_numbers = #tpu.dot_dimension_numbers<[1], [0], [0], [1], [0, 0, 1, 1], [], []>} : vector<8x4xbf16>, vector<4x128xbf16>, vector<8x128xf32> -> vector<8x128xf32>
    %c1 = arith.constant 1 : index
    %c0_11 = arith.constant 0 : index
    %c0_12 = arith.constant 0 : index
    %36 = vector.load %arg2[%c1, %c0_11, %c0_12] : memref<3x8x4xbf16, #tpu.memory_space<vmem>>, vector<1x8x4xbf16>
    %37 = vector.shape_cast %36 : vector<1x8x4xbf16> to vector<8x4xbf16>
    %38 = arith.truncf %0 : vector<4x128xf32> to vector<4x128xbf16>
    %cst_13 = arith.constant dense<0.000000e+00> : vector<8x128xf32>
    %39 = tpu.matmul %37, %38, %cst_13 {dimension_numbers = #tpu.dot_dimension_numbers<[1], [0], [0], [1], [0, 0, 1, 1], [], []>} : vector<8x4xbf16>, vector<4x128xbf16>, vector<8x128xf32> -> vector<8x128xf32>
    %40 = arith.addf %35, %39 : vector<8x128xf32>
    %c2 = arith.constant 2 : index
    %c0_14 = arith.constant 0 : index
    %c0_15 = arith.constant 0 : index
    %41 = vector.load %arg2[%c2, %c0_14, %c0_15] : memref<3x8x4xbf16, #tpu.memory_space<vmem>>, vector<1x8x4xbf16>
    %42 = vector.shape_cast %41 : vector<1x8x4xbf16> to vector<8x4xbf16>
    %43 = arith.truncf %31 : vector<4x128xf32> to vector<4x128xbf16>
    %cst_16 = arith.constant dense<0.000000e+00> : vector<8x128xf32>
    %44 = tpu.matmul %42, %43, %cst_16 {dimension_numbers = #tpu.dot_dimension_numbers<[1], [0], [0], [1], [0, 0, 1, 1], [], []>} : vector<8x4xbf16>, vector<4x128xbf16>, vector<8x128xf32> -> vector<8x128xf32>
    %45 = arith.addf %40, %44 : vector<8x128xf32>
    %c0_17 = arith.constant 0 : index
    %c0_18 = arith.constant 0 : index
    %46 = vector.load %arg3[%c0_17, %c0_18] : memref<8x1xf32, #tpu.memory_space<vmem>>, vector<8x1xf32>
    %47 = vector.broadcast %46 : vector<8x1xf32> to vector<8x128xf32>
    %48 = arith.addf %45, %47 : vector<8x128xf32>
    %cst_19 = arith.constant 0.000000e+00 : f32
    %49 = vector.broadcast %cst_19 : f32 to vector<8x128xf32>
    %50 = arith.maximumf %48, %49 : vector<8x128xf32>
    %c127_i32_20 = arith.constant 127 : i32
    %51 = tpu.dynamic_rotate %50 by %c127_i32_20 dim 1 : vector<8x128xf32>, i32 -> vector<8x128xf32>
    %52 = arith.maximumf %50, %51 : vector<8x128xf32>
    %c126_i32 = arith.constant 126 : i32
    %53 = tpu.dynamic_rotate %52 by %c126_i32 dim 1 : vector<8x128xf32>, i32 -> vector<8x128xf32>
    %54 = arith.maximumf %52, %53 : vector<8x128xf32>
    %c124_i32 = arith.constant 124 : i32
    %55 = tpu.dynamic_rotate %54 by %c124_i32 dim 1 : vector<8x128xf32>, i32 -> vector<8x128xf32>
    %56 = arith.maximumf %54, %55 : vector<8x128xf32>
    %c120_i32 = arith.constant 120 : i32
    %57 = tpu.dynamic_rotate %56 by %c120_i32 dim 1 : vector<8x128xf32>, i32 -> vector<8x128xf32>
    %58 = arith.maximumf %56, %57 : vector<8x128xf32>
    %c112_i32 = arith.constant 112 : i32
    %59 = tpu.dynamic_rotate %58 by %c112_i32 dim 1 : vector<8x128xf32>, i32 -> vector<8x128xf32>
    %60 = arith.maximumf %58, %59 : vector<8x128xf32>
    %c96_i32 = arith.constant 96 : i32
    %61 = tpu.dynamic_rotate %60 by %c96_i32 dim 1 : vector<8x128xf32>, i32 -> vector<8x128xf32>
    %62 = arith.maximumf %60, %61 : vector<8x128xf32>
    %63 = vector.extract_strided_slice %62 {offsets = [0, 0], sizes = [8, 1], strides = [1, 1]} : vector<8x128xf32> to vector<8x1xf32>
    %64 = vector.extract_strided_slice %62 {offsets = [0, 64], sizes = [8, 1], strides = [1, 1]} : vector<8x128xf32> to vector<8x1xf32>
    %65 = tpu.concatenate %63, %64 in 1 : vector<8x1xf32>, vector<8x1xf32> -> vector<8x2xf32>
    %c0_21 = arith.constant 0 : index
    %c0_22 = arith.constant 0 : index
    %66 = vector.load %arg4[%c0_21, %c0_22] : memref<8x2xf32, #tpu.memory_space<vmem>>, vector<8x2xf32>
    tpu.vector_store %arg4[%c0_21, %c0_22], %65 {strides = array<i32>} : memref<8x2xf32, #tpu.memory_space<vmem>>, vector<8x2xf32>,
    return
  }
  func.func @transform_0(%arg0: i32) -> (i32, i32) {
    %c0_i32 = arith.constant 0 : i32
    %c0_i32_0 = arith.constant 0 : i32
    %c0_i32_1 = arith.constant 0 : i32
    return %c0_i32, %c0_i32_0 : i32, i32
  }
  func.func @transform_1(%arg0: i32) -> (i32, i32, i32) {
    %c0_i32 = arith.constant 0 : i32
    %c0_i32_0 = arith.constant 0 : i32
    %c0_i32_1 = arith.constant 0 : i32
    %c0_i32_2 = arith.constant 0 : i32
    return %c0_i32, %c0_i32_0, %c0_i32_1 : i32, i32, i32
  }
  func.func @transform_2(%arg0: i32) -> (i32, i32) {
    %c0_i32 = arith.constant 0 : i32
    %c0_i32_0 = arith.constant 0 : i32
    %c0_i32_1 = arith.constant 0 : i32
    return %c0_i32, %c0_i32_0 : i32, i32
  }
  func.func @transform_3(%arg0: i32) -> (i32, i32) {
    %c0_i32 = arith.constant 0 : i32
    %c0_i32_0 = arith.constant 0 : i32
    %c0_i32_1 = arith.constant 0 : i32
    return %c0_i32, %c0_i32_0 : i32, i32
  }
}

</mosaic_0001>

<bundles_post_ra>
// kernel: tpu_custom_call.1
= control target key start
LH: loop header
LB: loop body
LE: loop exit
PB: predicated region body
PF: predicated region fallthrough
CT: control target
= control target key end

     0   :  { %s164_s14 = smov 127   ;;  %s165_s15 = smov 1   ;;  %vm51_vm0 = vcmask 1041408   ;;  %vm47_vm1 = vcmask 31744   ;;  %v166_v5 = vmov 0   ;;  %v16_v6 = vlaneseq  ;;  %s219_s0 = inlined_call_operand.vmem [shape: f32[4,128], index: 0, kind: input, shape index: {}]   ;;  %s220_s1 = inlined_call_operand.vmem [shape: bf16[3,8,4], index: 1, kind: input, shape index: {}]   ;;  %s221_s2 = inlined_call_operand.vmem [shape: f32[8,1], index: 2, kind: input, shape index: {}]   ;;  %s222_s3 = inlined_call_operand.vmem [shape: f32[8,2], index: 3, kind: output, shape index: {}]  }
   0x1   :  { %v15_v0 = vld [vmem:[%s219_s0] sm:$0xf]  ;;  %v148_v3 = vld [vmem:[%s220_s1 + $0x4] sm:$0xf]  ;;  %162 = vset.pattern.permute.xlu1 %v166_v5  ;;  %163 = vset.pattern.permute.xlu0 %v166_v5  ;;  %v151_v13 = vld [vmem:[%s220_s1 + $0x8] sm:$0xf] }
   0x2   :  { %37 = vrot.lane.b32.xlu0 %v15_v0, %s164_s14  ;;  %v46_v1 = vpack.c.bf16 %v15_v0, %v15_v0  ;;  %v110_v4 = vld [vmem:[%s221_s2] sm:$0xff]  ;;  %v17_v7 = vand.u32 127, %v16_v6  ;;  %s167_s22 = smov 126   ;;  %s169_s23 = smov 120   ;;  %vm140_vm4 = vcmask 7168   ;;  %vm142_vm5 = vcmask 15360  }
   0x3   :  { %113 = vperm.xlu1 %162, %v110_v4   ;;  %v42_v18 = vld [vmem:[%s220_s1] sm:$0xf]  ;;  %s168_s1 = smov 124   ;;  %s170_s24 = smov 112  }
   0x4   :  { %v53_v2 = vsel %vm51_vm0, %v46_v1, 0  ;;  %v22_v8 = vand.u32 63, %v17_v7  ;;  %s171_s25 = smov 96   ;;  %s172_s26 = smov 65  }
   0x5   :  { %62 = vmatpush.bf16.msra.mxu0 %v53_v2 }
   0x6   :  { %vm36_vm2 = vcmp.eq.s32.totalorder %v22_v8, 63  ;;  %vm30_vm3 = vcmp.eq.s32.totalorder %v22_v8, 0 }
   0x8   :  { %149 = vmatmul.msk.bf16.vlgmr.msra.gmra.mxu0 %vm47_vm1, %v148_v3 }
   0xa   :  { %31 = vrot.lane.b32.xlu0 %v15_v0, %s165_s15 }
  0x74   :  { %v38_v9 = vpop.permute.xlu0 %37 }
  0x75   :  { %v41_v10 = vsel %vm36_vm2, 0.0, %v38_v9  ;;  %v114_v24 = vpop.permute.xlu1 %113 }
  0x76   :  { %v89_v11 = vpack.c.bf16 %v41_v10, %v41_v10 }
  0x78   :  { %v94_v12 = vsel %vm51_vm0, %v89_v11, 0 }
  0x79   :  { %103 = vmatpush.bf16.msra.mxu2 %v94_v12 }
  0x7c   :  { %152 = vmatmul.msk.bf16.vlgmr.msra.gmra.mxu2 %vm47_vm1, %v151_v13  ;;  %v32_v14 = vpop.permute.xlu0 %31 }
  0x7d   :  { %v35_v15 = vsel %vm30_vm3, 0.0, %v32_v14 }
  0x7e   :  { %v43_v16 = vpack.c.bf16 %v35_v15, %v35_v15 }
  0x80   :  { %v72_v17 = vsel %vm51_vm0, %v43_v16, 0 }
  0x81   :  { %81 = vmatpush.bf16.msra.mxu1 %v72_v17 }
  0x84   :  { %150 = vmatmul.msk.bf16.vlgmr.msra.gmra.mxu1 %vm47_vm1, %v42_v18 }
  0x85   :  { %v64_v19 = vpop.f32.mrf.mxu0 }
  0x8d   :  { %v66_v20 = vpop.f32.mrf.mxu0 }
  0xff   :  { %v105_v21 = vpop.f32.mrf.mxu2 }
 0x101   :  { %v83_v22 = vpop.f32.mrf.mxu1 }
 0x102   :  { %v84_v23 = vadd.f32 %v83_v22, %v64_v19 }
 0x104   :  { %v109_v25 = vadd.f32 %v105_v21, %v84_v23 }
 0x106   :  { %v116_v26 = vadd.f32 %v114_v24, %v109_v25 }
 0x107   :  { %v107_v27 = vpop.f32.mrf.mxu2 }
 0x108   :  { %v117_v28 = vmax.f32 %v116_v26, 0.0 }
 0x109   :  { %v85_v29 = vpop.f32.mrf.mxu1 }
 0x10a   :  { %118 = vrot.lane.b32.xlu1 %v117_v28, %s164_s14 }
 0x17c   :  { %v119_v30 = vpop.permute.xlu1 %118 }
 0x17d   :  { %v120_v31 = vmax.f32 %v117_v28, %v119_v30 }
 0x17f   :  { %121 = vrot.lane.b32.xlu2 %v120_v31, %s167_s22 }
 0x1d9   :  { %v122_v32 = vpop.permute.xlu2 %121 }
 0x1da   :  { %v123_v33 = vmax.f32 %v120_v31, %v122_v32 }
 0x1dc   :  { %124 = vrot.lane.b32.xlu2 %v123_v33, %s168_s1 }
 0x236   :  { %v125_v34 = vpop.permute.xlu2 %124 }
 0x237   :  { %v126_v35 = vmax.f32 %v123_v33, %v125_v34 }
 0x239   :  { %127 = vrot.lane.b32.xlu0 %v126_v35, %s169_s23 }
 0x2ab   :  { %v128_v36 = vpop.permute.xlu0 %127 }
 0x2ac   :  { %v129_v37 = vmax.f32 %v126_v35, %v128_v36 }
 0x2ae   :  { %130 = vrot.lane.b32.xlu1 %v129_v37, %s170_s24 }
 0x320   :  { %v131_v38 = vpop.permute.xlu1 %130 }
 0x321   :  { %v132_v39 = vmax.f32 %v129_v37, %v131_v38 }
 0x323   :  { %133 = vrot.lane.b32.xlu2 %v132_v39, %s171_s25 }
 0x37d   :  { %v134_v40 = vpop.permute.xlu2 %133 }
 0x37e   :  { %v135_v41 = vmax.f32 %v132_v39, %v134_v40 }
 0x380   :  { %137 = vrot.lane.b32.xlu0 %v135_v41, %s172_s26 }
 0x3f2   :  { %v138_v42 = vpop.permute.xlu0 %137 }
 0x3f3   :  { %v141_v43 = vsel %vm140_vm4, %v135_v41, %v138_v42 }
 0x3f4   :  { %143 = vst.msk [vmem:[%s222_s3] sm:$0xff] %vm142_vm5, %v141_v43 }

</bundles_post_ra>
